<compile_context>
chip_gen: v7x
topology: tpu7x:2x2x1
jax: 0.10.0
libtpu: 0.0.40
codegen_flags: <defaults>
</compile_context>

<pallas_src>
import functools

import jax
import jax.numpy as jnp
from jax.experimental import pallas as pl
from jax.experimental.pallas import tpu as pltpu

_INV_LN2 = 1.4426950408889634  # 1 / ln(2)


def _int_pow(x, p):
    """x**p for a non-negative Python int p via exact repeated multiplies."""
    result = None
    base = x
    while p > 0:
        if p & 1:
            result = base if result is None else result * base
        p >>= 1
        if p:
            base = base * base
    return jnp.ones_like(x) if result is None else result


def _tailed_focal_kernel(logits_ref, labels_ref, out_ref, *,
                         beta, gamma, threshold, n_rows, block_n, bf16_exp):
    # Native-dtype tile from HBM; all math in f32.
    x = logits_ref[...].astype(jnp.float32)       # (block_n, C)
    labels = labels_ref[...]                      # (block_n, 1) int32

    # Row-validity mask for the (possibly ragged) last tile.  Applied to the
    # INPUT before max/exp so out-of-bounds garbage can never create Inf/NaN.
    row = (jax.lax.broadcasted_iota(jnp.int32, (x.shape[0], 1), 0)
           + pl.program_id(0) * block_n)                           # (bn, 1)
    valid = row < n_rows                                           # (bn, 1)
    x = jnp.where(valid, x, 0.0)

    # Log-space softmax gather: log Pt = x[label] - m - log(sum(exp(x - m))).
    m = jnp.max(x, axis=1, keepdims=True)                          # (bn, 1)
    xm = x - m
    if bf16_exp:
        # Optional v7x EUP path: bf16 exp ~2x throughput, row-sum stays f32.
        e = jnp.exp(xm.astype(jnp.bfloat16)).astype(jnp.float32)
    else:
        e = jnp.exp(xm)
    log_denom = jnp.log(jnp.sum(e, axis=1, keepdims=True))         # (bn, 1)

    col = jax.lax.broadcasted_iota(jnp.int32, x.shape, 1)          # (bn, C)
    x_lab = jnp.sum(jnp.where(col == labels, x, 0.0),
                    axis=1, keepdims=True)                         # (bn, 1)

    log_pt = x_lab - m - log_denom                                 # ln(Pt) <= 0
    pt = jnp.exp(log_pt)
    log2_pt = log_pt * _INV_LN2

    # Focal term: -(1 - Pt)^gamma * log2(Pt)  (integer gamma -> exact multiplies)
    if float(gamma) == int(gamma) and int(gamma) >= 0:
        pow_term = _int_pow(1.0 - pt, int(gamma))
    else:
        pow_term = jnp.power(1.0 - pt, float(gamma))
    fl = -pow_term * log2_pt

    # Tail term: -log2(Pt_dash ** beta) = -beta * gate * log2(Pt),
    # gate = 1 iff label index >= threshold (matches torch reference).
    gate = (labels >= threshold).astype(jnp.float32)
    tail = -float(beta) * gate * log2_pt

    loss = (fl + tail) * valid.astype(jnp.float32)                 # (bn, 1)
    partial = jnp.sum(loss)                                        # scalar

    # Lane-dense write of the per-tile partial (wrapper reads [:, 0, 0]).
    out_ref[...] = jnp.full((1, 8, 128), partial, dtype=jnp.float32)


def _choose_tiling(n, c, itemsize):
    """Pick rows-per-tile and the scoped VMEM limit from the real footprint."""
    # Sublane packing: f32 -> 8, bf16 -> 16, 1-byte -> 32.
    row_align = max(8, 32 // max(1, int(itemsize)))
    c_pad = ((c + 127) // 128) * 128

    # Physical VMEM (64 MiB on v7x, 128 MiB on v5e/v6e); conservative fallback.
    try:
        info = pltpu.get_tpu_info()
        vmem_cap = int(getattr(info, "vmem_capacity_bytes", 64 * 1024 * 1024))
    except Exception:  # detection unavailable -> assume the small-VMEM chip
        vmem_cap = 64 * 1024 * 1024

    if vmem_cap <= 64 * 1024 * 1024:          # v7x-class
        sizing_budget = 40 * 1024 * 1024
        vmem_limit = 48 * 1024 * 1024
    else:                                     # v5e / v6e (128 MiB VMEM)
        sizing_budget = 64 * 1024 * 1024
        vmem_limit = 96 * 1024 * 1024

    # Per-row VMEM bytes:
    #   2x double-buffered logits block (native dtype, lane-padded)
    # + 2x double-buffered (block_n, 1) int32 labels block (lane-padded to 128)
    # + ~6 live full-tile f32 temporaries (cast, x-m, exp, iota, select, ...)
    per_row = 2 * c_pad * int(itemsize) + 2 * 128 * 4 + 6 * c_pad * 4

    block_n = max(row_align, sizing_budget // per_row)
    block_n = min(block_n, 32768)
    block_n = (block_n // row_align) * row_align

    if n <= row_align:
        block_n = n                     # single full-extent block (no ragged)
    else:
        # Keep block_n a multiple of row_align and <= n; the last grid step
        # may be ragged and is masked in-kernel.
        block_n = min(block_n, (n // row_align) * row_align)
        block_n = max(row_align, block_n)
    return block_n, vmem_limit


def tailed_focal_loss(logits, labels, *, threshold, beta=2, gamma=2,
                      reduction="mean", bf16_exp=False):
    """logits: (N, C) float (native dtype kept); labels: (N,) or (N,1) int.

    Returns scalar f32 loss (mean or sum), matching the torch module.
    """
    n, c = logits.shape
    labels2d = labels.reshape(-1)[:n].reshape(n, 1).astype(jnp.int32)
    # NOTE: logits stay in their native HBM dtype (no wrapper upcast, no pad).

    block_n, vmem_limit = _choose_tiling(n, c, logits.dtype.itemsize)
    num_tiles = pl.cdiv(n, block_n)

    kernel = functools.partial(
        _tailed_focal_kernel,
        beta=beta, gamma=gamma, threshold=threshold,
        n_rows=n, block_n=block_n, bf16_exp=bf16_exp,
    )

    partials = pl.pallas_call(
        kernel,
        out_shape=jax.ShapeDtypeStruct((num_tiles, 8, 128), jnp.float32),
        grid=(num_tiles,),
        in_specs=[
            pl.BlockSpec((block_n, c), lambda i: (i, 0)),
            pl.BlockSpec((block_n, 1), lambda i: (i, 0)),
        ],
        out_specs=pl.BlockSpec((1, 8, 128), lambda i: (i, 0, 0)),
        compiler_params=pltpu.CompilerParams(
            dimension_semantics=("parallel",),
            vmem_limit_bytes=vmem_limit,
        ),
    )(logits, labels2d)

    total = jnp.sum(partials[:, 0, 0])
    if reduction == "mean":
        return total / jnp.float32(n)
    return total  # 'sum'


def _reference(logits, labels, *, threshold, beta, gamma, reduction):
    """Pure-JAX port of the torch module for a correctness check."""
    p = jax.nn.softmax(logits.astype(jnp.float32), axis=1)
    pt = p[jnp.arange(logits.shape[0]), labels.reshape(-1)]
    log2_pt = jnp.log(pt) / jnp.log(2.0)
    fl = -((1.0 - pt) ** gamma) * log2_pt
    gate = (labels.reshape(-1) >= threshold).astype(jnp.float32)
    loss = fl - beta * gate * log2_pt
    return jnp.mean(loss) if reduction == "mean" else jnp.sum(loss)


def _check(logits, labels, *, threshold, rel_tol):
    out = tailed_focal_loss(logits, labels, threshold=threshold,
                            beta=2, gamma=2, reduction="mean")
    out = jax.block_until_ready(out)
    ref = _reference(logits, labels, threshold=threshold,
                     beta=2, gamma=2, reduction="mean")
    assert abs(float(out) - float(ref)) <= rel_tol * max(1.0, abs(float(ref))), (
        float(out), float(ref))


if __name__ == "__main__":
    key = jax.random.PRNGKey(0)
    k1, k2, k3, k4, k5, k6 = jax.random.split(key, 6)

    # f32, aligned rows: batch=8, 16 classes, threshold=8.
    N, C = 8, 16
    logits = jax.random.normal(k1, (N, C), dtype=jnp.float32)
    labels = jax.random.randint(k2, (N,), 0, C, dtype=jnp.int32)
    _check(logits, labels, threshold=8, rel_tol=1e-4)

    # f32, ragged row count (exercises in-kernel masking of the last tile).
    N2 = 13
    logits2 = jax.random.normal(k3, (N2, C), dtype=jnp.float32)
    labels2 = jax.random.randint(k4, (N2,), 0, C, dtype=jnp.int32)
    _check(logits2, labels2, threshold=8, rel_tol=1e-4)

    # bf16 logits streamed in native dtype (f32 math in-kernel).
    N3 = 32
    logits3 = jax.random.normal(k5, (N3, C), dtype=jnp.bfloat16)
    labels3 = jax.random.randint(k6, (N3,), 0, C, dtype=jnp.int32)
    _check(logits3, labels3, threshold=8, rel_tol=1e-2)

    print("KERNEL_OK")
</pallas_src>

<mosaic_0001>
module attributes {stable_mosaic.version = 11 : i64} {
  func.func @_tailed_focal_kernel(%arg0: i32, %arg1: memref<8x16xf32, #tpu.memory_space<vmem>>, %arg2: memref<8x1xi32, #tpu.memory_space<vmem>>, %arg3: memref<1x8x128xf32, #tpu.memory_space<vmem>>) attributes {dimension_semantics = [#tpu.dimension_semantics<parallel>], iteration_bounds = array<i64: 1>, scalar_prefetch = 0 : i64, scratch_operands = 0 : i64, tpu.core_type = #tpu.core_type<tc>, window_params = [{transform_indices = @transform_0, window_bounds = array<i64: 8, 16>}, {transform_indices = @transform_1, window_bounds = array<i64: 8, 1>}, {transform_indices = @transform_2, window_bounds = array<i64: 1, 8, 128>}]} {
    %c0 = arith.constant 0 : index
    %c0_0 = arith.constant 0 : index
    %0 = vector.load %arg1[%c0, %c0_0] : memref<8x16xf32, #tpu.memory_space<vmem>>, vector<8x16xf32>
    %c0_1 = arith.constant 0 : index
    %c0_2 = arith.constant 0 : index
    %1 = vector.load %arg2[%c0_1, %c0_2] : memref<8x1xi32, #tpu.memory_space<vmem>>, vector<8x1xi32>
    %2 = tpu.iota {dimensions = array<i32: 0>} : vector<8x1xi32>
    %c8_i32 = arith.constant 8 : i32
    %3 = arith.muli %arg0, %c8_i32 : i32
    %4 = vector.broadcast %3 : i32 to vector<8x1xi32>
    %5 = arith.addi %2, %4 : vector<8x1xi32>
    %c8_i32_3 = arith.constant 8 : i32
    %6 = vector.broadcast %c8_i32_3 : i32 to vector<8x1xi32>
    %7 = arith.cmpi slt, %5, %6 : vector<8x1xi32>
    %cst = arith.constant 0.000000e+00 : f32
    %8 = vector.shape_cast %7 : vector<8x1xi1> to vector<8x1xi1>
    %9 = vector.broadcast %8 : vector<8x1xi1> to vector<8x16xi1>
    %10 = vector.broadcast %cst : f32 to vector<8x16xf32>
    %11 = arith.select %9, %0, %10 : vector<8x16xi1>, vector<8x16xf32>
    %cst_4 = arith.constant dense<0xFF800000> : vector<8xf32>
    %12 = vector.multi_reduction <maximumf>, %11, %cst_4 [1] : vector<8x16xf32> to vector<8xf32>
    %13 = vector.shape_cast %12 : vector<8xf32> to vector<8x1xf32>
    %14 = vector.broadcast %13 : vector<8x1xf32> to vector<8x16xf32>
    %15 = arith.subf %11, %14 : vector<8x16xf32>
    %16 = math.exp %15 : vector<8x16xf32>
    %cst_5 = arith.constant dense<0.000000e+00> : vector<8xf32>
    %17 = vector.multi_reduction <add>, %16, %cst_5 [1] : vector<8x16xf32> to vector<8xf32>
    %18 = vector.shape_cast %17 : vector<8xf32> to vector<8x1xf32>
    %19 = math.log %18 : vector<8x1xf32>
    %20 = tpu.iota {dimensions = array<i32: 1>} : vector<8x16xi32>
    %21 = vector.broadcast %1 : vector<8x1xi32> to vector<8x16xi32>
    %22 = arith.cmpi eq, %20, %21 : vector<8x16xi32>
    %cst_6 = arith.constant 0.000000e+00 : f32
    %23 = vector.broadcast %cst_6 : f32 to vector<8x16xf32>
    %24 = arith.select %22, %11, %23 : vector<8x16xi1>, vector<8x16xf32>
    %cst_7 = arith.constant dense<0.000000e+00> : vector<8xf32>
    %25 = vector.multi_reduction <add>, %24, %cst_7 [1] : vector<8x16xf32> to vector<8xf32>
    %26 = vector.shape_cast %25 : vector<8xf32> to vector<8x1xf32>
    %27 = arith.subf %26, %13 : vector<8x1xf32>
    %28 = arith.subf %27, %19 : vector<8x1xf32>
    %29 = math.exp %28 : vector<8x1xf32>
    %cst_8 = arith.constant 1.44269502 : f32
    %30 = vector.broadcast %cst_8 : f32 to vector<8x1xf32>
    %31 = arith.mulf %28, %30 : vector<8x1xf32>
    %cst_9 = arith.constant 1.000000e+00 : f32
    %32 = vector.broadcast %cst_9 : f32 to vector<8x1xf32>
    %33 = arith.subf %32, %29 : vector<8x1xf32>
    %34 = arith.mulf %33, %33 : vector<8x1xf32>
    %cst_10 = arith.constant 0.000000e+00 : f32
    %35 = vector.broadcast %cst_10 : f32 to vector<8x1xf32>
    %36 = arith.subf %35, %34 : vector<8x1xf32>
    %37 = arith.mulf %36, %31 : vector<8x1xf32>
    %c8_i32_11 = arith.constant 8 : i32
    %38 = vector.broadcast %c8_i32_11 : i32 to vector<8x1xi32>
    %39 = arith.cmpi sge, %1, %38 : vector<8x1xi32>
    %40 = arith.extui %39 : vector<8x1xi1> to vector<8x1xi32>
    %41 = arith.sitofp %40 : vector<8x1xi32> to vector<8x1xf32>
    %cst_12 = arith.constant -2.000000e+00 : f32
    %42 = vector.broadcast %cst_12 : f32 to vector<8x1xf32>
    %43 = arith.mulf %42, %41 : vector<8x1xf32>
    %44 = arith.mulf %43, %31 : vector<8x1xf32>
    %45 = arith.addf %37, %44 : vector<8x1xf32>
    %46 = arith.extui %7 : vector<8x1xi1> to vector<8x1xi32>
    %47 = arith.sitofp %46 : vector<8x1xi32> to vector<8x1xf32>
    %48 = arith.mulf %45, %47 : vector<8x1xf32>
    %49 = vector.shape_cast %48 : vector<8x1xf32> to vector<1x8x1xf32>
    %cst_13 = arith.constant dense<0.000000e+00> : vector<1xf32>
    %50 = vector.multi_reduction <add>, %49, %cst_13 [1, 2] : vector<1x8x1xf32> to vector<1xf32>
    %51 = vector.shape_cast %50 : vector<1xf32> to vector<1x1x1xf32>
    %52 = vector.extract %51[0, 0, 0] : f32 from vector<1x1x1xf32>
    %53 = vector.broadcast %52 : f32 to vector<1x8x128xf32>
    %c0_14 = arith.constant 0 : index
    %c0_15 = arith.constant 0 : index
    %c0_16 = arith.constant 0 : index
    %54 = vector.load %arg3[%c0_14, %c0_15, %c0_16] : memref<1x8x128xf32, #tpu.memory_space<vmem>>, vector<1x8x128xf32>
    tpu.vector_store %arg3[%c0_14, %c0_15, %c0_16], %53 {strides = array<i32>} : memref<1x8x128xf32, #tpu.memory_space<vmem>>, vector<1x8x128xf32>,
    return
  }
  func.func @transform_0(%arg0: i32) -> (i32, i32) {
    %c0_i32 = arith.constant 0 : i32
    %c0_i32_0 = arith.constant 0 : i32
    return %arg0, %c0_i32 : i32, i32
  }
  func.func @transform_1(%arg0: i32) -> (i32, i32) {
    %c0_i32 = arith.constant 0 : i32
    %c0_i32_0 = arith.constant 0 : i32
    return %arg0, %c0_i32 : i32, i32
  }
  func.func @transform_2(%arg0: i32) -> (i32, i32, i32) {
    %c0_i32 = arith.constant 0 : i32
    %c0_i32_0 = arith.constant 0 : i32
    %c0_i32_1 = arith.constant 0 : i32
    return %arg0, %c0_i32, %c0_i32_0 : i32, i32, i32
  }
}

</mosaic_0001>

<bundles_post_ra>
// kernel: tpu_custom_call.1
= control target key start
LH: loop header
LB: loop body
LE: loop exit
PB: predicated region body
PF: predicated region fallthrough
CT: control target
= control target key end

     0   :  { %vm23_vm0 = vcmask 130048   ;;  %v126_v2 = vmov 0   ;;  %s165_s0 = inlined_call_operand.vmem [shape: f32[8,16], index: 0, kind: input, shape index: {}]   ;;  %s166_s1 = inlined_call_operand.vmem [shape: s32[8,1], index: 1, kind: input, shape index: {}]   ;;  %s167_s2 = inlined_call_operand.hbm [shape: f32[1,8,128], index: 2, kind: output, shape index: {}]  }
   0x1   :  { %v12_v0 = vld [vmem:[%s165_s0] sm:$0xff]  ;;  %95 = vset.pattern.permute.xlu0 %v126_v2 }
   0x2   :  { %v24_v1 = vsel %vm23_vm0, %v12_v0, -inf }
   0x3   :  { %7 = vsyncpa [#allocation3], 0  ;;  %25 = vmax.xlane.f32.xlu0 %v24_v1  ;;  %v13_v3 = vld [vmem:[%s166_s1] sm:$0xff]  ;;  %v35_v7 = vlaneseq  ;;  %v127_v22 = vmov 0.0   ;;  %vm62_vm3 = vcmask 7168   ;;  %s128_s0 = smov [#allocation2]  }
   0x4   :  { %vm54_vm2 = vcmp.ge.s32.totalorder %v13_v3, 8  ;;  %s81_s1 = sshll.u32 %s128_s0, 4  ;;  %s82_s1 = int_to_ptr.vmem [resolvable:$true] %s81_s1 }
   0x5   :  { %v36_v8 = vand.u32 127, %v35_v7  ;;  %v89_v23 = vsel %vm54_vm2, 1.0, %v127_v22  ;;  %s102_s14 = scalar_lea.vmem %s82_s1, 128  ;;  %p107_p1 = scmp.lt.s32.totalorder %s82_s1, %s82_s1 }
   0x6   :  { %v57_v25 = vmul.f32 -2.0, %v89_v23  ;;  %p103_p0 = scmp.ne.s32.totalorder %s82_s1, %s102_s14  ;;  %p108_p2 = scmp.lt.s32.totalorder %s102_s14, %s102_s14 }
   0x8   :  { %p109_p3 = por %p108_p2, %p107_p1 }
   0xa   :  { %p110_p4 = pnand %p109_p3, %p103_p0 }
  0x19   :  { %38 = vperm.xlu0 %95, %v13_v3  }
  0x90   :  { %v26_v4 = vpop.xlane.xlu0 %25 }
  0x91   :  { %v27_v5 = vsub.f32 %v12_v0, %v26_v4 }
  0x93   :  { %v28_v6 = vmul.f32 1.442695, %v27_v5 }
  0x95   :  { %96 = vpow2.f32 %v28_v6 }
  0x98   :  { %v39_v9 = vpop.permute.xlu0 %38 }
  0x99   :  { %vm40_vm1 = vcmp.eq.s32.totalorder %v36_v8, %v39_v9 }
  0x9a   :  { %v41_v11 = vsel %vm40_vm1, %v12_v0, 0.0 }
  0x9b   :  { %v42_v13 = vsel %vm23_vm0, %v41_v11, 0.0 }
  0x9f   :  { %v97_v10 = vpop.eup %96 }
  0xa0   :  { %v30_v12 = vsel %vm23_vm0, %v97_v10, 0.0 }
  0xa1   :  { %31 = vadd.xlane.f32.xlu1 %v30_v12 }
  0xa5   :  { %43 = vadd.xlane.f32.xlu1 %v42_v13 }
 0x12e   :  { %v32_v14 = vpop.xlane.xlu1 %31 }
 0x12f   :  { %98 = vlog2.f32 %v32_v14 }
 0x132   :  { %v44_v15 = vpop.xlane.xlu1 %43 }
 0x133   :  { %v45_v18 = vsub.f32 %v44_v15, %v26_v4 }
 0x139   :  { %v99_v16 = vpop.eup %98 }
 0x13a   :  { %v34_v17 = vmul.f32 0.6931472, %v99_v16 }
 0x13c   :  { %v46_v19 = vsub.f32 %v45_v18, %v34_v17 }
 0x13e   :  { %v47_v20 = vmul.f32 1.442695, %v46_v19 }
 0x140   :  { %100 = vpow2.f32 %v47_v20  ;;  %v58_v29 = vmul.f32 %v57_v25, %v47_v20 }
 0x14a   :  { %v101_v21 = vpop.eup %100 }
 0x14b   :  { %v50_v24 = vsub.f32 1.0, %v101_v21 }
 0x14d   :  { %v51_v26 = vmul.f32 %v50_v24, %v50_v24 }
 0x14f   :  { %v52_v27 = vsub.f32 0.0, %v51_v26 }
 0x151   :  { %v53_v28 = vmul.f32 %v52_v27, %v47_v20 }
 0x153   :  { %v59_v30 = vadd.f32 %v58_v29, %v53_v28 }
 0x155   :  { %v63_v31 = vsel %vm62_vm3, %v59_v30, 0.0 }
 0x156   :  { %64 = vadd.xlane.f32.xlu1 %v63_v31 }
 0x1e3   :  { %v65_v32 = vpop.xlane.xlu1 %64 }
 0x1e4   :  { %v66_v33 = vrot.slane %v65_v32, 4 }
 0x1e6   :  { %v67_v34 = vadd.f32 %v66_v33, %v65_v32 }
 0x1e8   :  { %v68_v35 = vrot.slane %v67_v34, 2 }
 0x1ea   :  { %v69_v36 = vadd.f32 %v68_v35, %v67_v34 }
 0x1ec   :  { %v70_v37 = vrot.slane %v69_v36, 1 }
 0x1ee   :  { %v71_v38 = vadd.f32 %v70_v37, %v69_v36 }
 0x1f0   :  { %90 = vpush %v71_v38 }
 0x221   :  { %s91_s13 = spop %90 }
 0x222   :  { %v73_v39 = vstv %s91_s13 }
 0x223   :  { %74 = vst [vmem:[#allocation2] sm:$0xff] %v73_v39 }
 0x224   :  { %113 = shalt.err (!%p110_p4)
}
 0x225   :  { %s114_s17 = scalar_lea.hbm %s167_s2, 128 }
 0x226   :  { %p115_p5 = scmp.ne.s32.totalorder %s167_s2, %s114_s17  ;;  %p118_p6 = scmp.lt.u32.totalorder %s114_s17, %s167_s2 }
 0x228   :  { %p120_p7 = pnand %p118_p6, %p115_p5 }
 0x22a   :  { %123 = shalt.err (!%p120_p7)
}
 0x22b   :  { %84 = dma.vmem_to_hbm [thread:$0]  %s82_s1, 128, %s167_s2, [#allocation3]  }
 0x22c   :  { %124 = dma.done.wait [#allocation3], 128  }
 0x22d   :  { %125 = vsyncadd [#allocation3], 4294967168 }
 0x22e   :  { %88 = vsyncpa [#allocation3], 1 }

</bundles_post_ra>
